<compile_context>
chip_gen: v7x
topology: tpu7x:2x2x1
jax: 0.10.0
libtpu: 0.0.40
codegen_flags: <defaults>
</compile_context>

<pallas_src>
import jax
import jax.numpy as jnp
from jax.experimental import pallas as pl
from jax.experimental.pallas import tpu as pltpu

# ----------------------- synthetic config (small, lane-dense) ----------------
TF_DIM = 21                 # target_feat one-hot dim ([*, N_res, 21])
C_Z = 128                   # pair embedding dim (real OpenFold c_z = 128) -> lane-dense
C_M = 128                   # sequence embedding dim (real c_m >= 256)      -> lane-dense
RELPOS_K = 4
NO_BINS = 2 * RELPOS_K + 1  # 9
ESM_EMB_DIM = 128           # synthetic stand-in for esm_model.embed_dim, 128-aligned
ESM_LAYERS = 4              # synthetic stand-in for esm_model.num_layers
NL = ESM_LAYERS + 1         # number of LM representation layers combined
RESTYPE_NUM = 20
N_TOKENS = RESTYPE_NUM + 3  # n_tokens_embed = 23 (pad / unk / mask)
LN_EPS = 1e-5

B, L = 2, 8                 # batch, N_res
M = B * L

# Row tile for the sequence kernel.  At toy M = 16 a single grid step avoids per-step
# pipeline overhead; at real N_res use TM = 128 (v5e) / 256 (v6e, v7x) and keep >= 2
# tiles so the v7x megacore can shard the "parallel" row axis across its two cores.
TM = M
# relpos row tile (multiple of 8).  At real L pick the biggest (TROW, L, C_Z) tile that
# fits VMEM; ~2x smaller on v7x (64 MiB VMEM) than v6e/v5e.
TROW = L


# --------------------------- Pallas kernels ---------------------------------
def seq_embed_kernel(esm_ref, wc_ref, tfoh_ref, gamma_ref, beta_ref,
                     w1_ref, b1_ref, w2_ref, b2_ref, emb_ref, out_ref):
    """s_s_0 = esm_s_mlp(LayerNorm(softmax(esm_s_combine) . esm_stack)) + embedding(tf).

    esm_ref : (TM, NL*E) bf16  -- LM layer reps, layers concatenated on the lane axis
    wc_ref  : (NL*E, E)  bf16  -- kron(softmax(esm_s_combine), I_E): combine as one matmul
    tfoh_ref: (TM, N_TOKENS) bf16 one-hot tokens (embedding gather on the MXU)
    """
    # layer combine on the MXU (single bf16 matmul, f32 accumulation)
    esm_s = jnp.dot(esm_ref[...], wc_ref[...], preferred_element_type=jnp.float32)

    # LayerNorm over the embedding axis (statistics kept in f32)
    mu = jnp.mean(esm_s, axis=-1, keepdims=True)
    var = jnp.mean((esm_s - mu) ** 2, axis=-1, keepdims=True)
    xn = (esm_s - mu) * jax.lax.rsqrt(var + LN_EPS)
    xn = xn * gamma_ref[...] + beta_ref[...]

    # MLP: Linear -> ReLU -> Linear.  bf16 MXU inputs, f32 accumulation.
    h = jnp.dot(xn.astype(jnp.bfloat16), w1_ref[...],
                preferred_element_type=jnp.float32) + b1_ref[...]
    h = jnp.maximum(h, 0.0)
    s = jnp.dot(h.astype(jnp.bfloat16), w2_ref[...],
                preferred_element_type=jnp.float32) + b2_ref[...]

    # + token embedding (one-hot gather on the MXU; padding_idx row is zero),
    # fused into the same output store.
    s = s + jnp.dot(tfoh_ref[...], emb_ref[...], preferred_element_type=jnp.float32)
    out_ref[...] = s                      # (TM, 128): lane-dense, unmasked stores


def relpos_kernel(ri_col_ref, ri_row_ref, w_ref, b_ref, out_ref):
    """pair_emb[i, j, :] = W_relpos[clip(ri[i]-ri[j], -k, k) + k, :] + b   (one row tile).

    ri_col_ref: (1, TROW, 1) int32 -- residue indices of this row tile (rows i)
    ri_row_ref: (1, 1, L)    int32 -- all residue indices, lane-dense (columns j)
    out_ref   : (1, TROW, L, C_Z)  -- lane-dense (C_Z = 128)
    """
    tr = ri_col_ref.shape[1]
    l = ri_row_ref.shape[2]
    cz = w_ref.shape[1]

    d = ri_col_ref[0] - ri_row_ref[0]                       # (TROW, L) int32
    # residue indices are integers, so nearest-bin argmin == clip to [-k, k]
    idx = jnp.clip(d, -RELPOS_K, RELPOS_K) + RELPOS_K       # int32 in [0, NO_BINS)

    w = w_ref[...]                                          # (NO_BINS, C_Z) f32
    acc = jnp.broadcast_to(b_ref[...][None], (tr, l, cz)).astype(jnp.float32)
    # 9-way select-accumulate on the VPU: no (L, L, NO_BINS) one-hot is materialized,
    # so nothing is padded from 9 -> 128 lanes.
    for b_i in range(NO_BINS):                              # static unroll, NO_BINS = 9
        sel = (idx == b_i).astype(jnp.float32)[:, :, None]  # (TROW, L, 1)
        acc = acc + sel * w[b_i:b_i + 1][None]              # (1, 1, C_Z) row broadcast
    out_ref[...] = acc[None]


# ----------------------------- wrappers --------------------------------------
def seq_embed_pallas(esm_flat, w_comb, tf_oh, p):
    m = esm_flat.shape[0]
    assert m % TM == 0
    full2 = lambda i: (0, 0)
    return pl.pallas_call(
        seq_embed_kernel,
        out_shape=jax.ShapeDtypeStruct((m, C_M), jnp.float32),
        grid=(m // TM,),
        in_specs=[
            pl.BlockSpec((TM, NL * ESM_EMB_DIM), lambda i: (i, 0)),   # esm stack, lane-folded
            pl.BlockSpec((NL * ESM_EMB_DIM, ESM_EMB_DIM), full2),     # combine matrix (bf16)
            pl.BlockSpec((TM, N_TOKENS), lambda i: (i, 0)),           # tf one-hot (bf16)
            pl.BlockSpec((1, ESM_EMB_DIM), full2),                    # ln gamma (f32)
            pl.BlockSpec((1, ESM_EMB_DIM), full2),                    # ln beta  (f32)
            pl.BlockSpec((ESM_EMB_DIM, C_M), full2),                  # mlp W1 (bf16)
            pl.BlockSpec((1, C_M), full2),                            # mlp b1 (f32)
            pl.BlockSpec((C_M, C_M), full2),                          # mlp W2 (bf16)
            pl.BlockSpec((1, C_M), full2),                            # mlp b2 (f32)
            pl.BlockSpec((N_TOKENS, C_M), full2),                     # embedding table (bf16)
        ],
        out_specs=pl.BlockSpec((TM, C_M), lambda i: (i, 0)),
        compiler_params=pltpu.CompilerParams(
            dimension_semantics=("parallel",),
            # Plenty for the toy size; re-derive for real OpenFold sizes (v7x: 64 MiB
            # physical VMEM, 2 TCs -> smaller per-core budget than a v6e-tuned tiling).
            vmem_limit_bytes=32 * 1024 * 1024,
        ),
    )(esm_flat, w_comb, tf_oh,
      p["ln_gamma"], p["ln_beta"],
      p["w1_bf16"], p["b1"], p["w2_bf16"], p["b2"], p["emb_bf16"])


def relpos_pallas(ri, p):
    b, l = ri.shape
    assert l % TROW == 0
    ri_col = ri[:, :, None].astype(jnp.int32)    # (B, L, 1): row-tile operand
    ri_row = ri[:, None, :].astype(jnp.int32)    # (B, 1, L): lane-dense column operand
    return pl.pallas_call(
        relpos_kernel,
        out_shape=jax.ShapeDtypeStruct((b, l, l, C_Z), jnp.float32),
        grid=(b, l // TROW),
        in_specs=[
            pl.BlockSpec((1, TROW, 1), lambda bi, r: (bi, r, 0)),
            pl.BlockSpec((1, 1, l), lambda bi, r: (bi, 0, 0)),
            pl.BlockSpec((NO_BINS, C_Z), lambda bi, r: (0, 0)),
            pl.BlockSpec((1, C_Z), lambda bi, r: (0, 0)),
        ],
        out_specs=pl.BlockSpec((1, TROW, l, C_Z), lambda bi, r: (bi, r, 0, 0)),
        compiler_params=pltpu.CompilerParams(
            dimension_semantics=("parallel", "parallel"),
            vmem_limit_bytes=32 * 1024 * 1024,
        ),
    )(ri_col, ri_row, p["w_relpos"], p["b_relpos"])


def input_embedder_forward(params, tf, ri, tf_esm):
    """Mirrors InputEmbedder.forward: returns (s_s_0 [B,L,C_m], s_z_0 [B,L,L,C_z])."""
    bb, ll, _ = tf.shape
    tf_idx = jnp.argmax(tf, axis=-1)                                     # [B, L]
    tf_oh = jax.nn.one_hot(tf_idx, N_TOKENS, dtype=jnp.bfloat16)         # [B, L, 23]

    # TODO(synk): _af2_idx_to_esm_idx / bos-eos plumbing only feed the external ESM LM,
    # which is stubbed with synthetic per-layer representations (tf_esm).
    # Fold softmax(esm_s_combine) into a single (NL*E, E) matrix so the layer-combine
    # runs as one MXU matmul inside the kernel: W_comb = kron(softmax(w), I_E).
    w = jax.nn.softmax(params["esm_s_combine"])                          # [NL]
    w_comb = (w[:, None, None] * jnp.eye(ESM_EMB_DIM, dtype=jnp.float32)[None]
              ).reshape(NL * ESM_EMB_DIM, ESM_EMB_DIM).astype(jnp.bfloat16)

    esm_flat = tf_esm.reshape(bb * ll, NL * ESM_EMB_DIM)                 # bf16, lane-folded

    s_s = seq_embed_pallas(
        esm_flat, w_comb, tf_oh.reshape(bb * ll, N_TOKENS), params
    ).reshape(bb, ll, C_M)

    s_z = relpos_pallas(ri, params)                                      # [B, L, L, C_z]
    return s_s, s_z


# --------------------------- pure-JAX reference ------------------------------
def reference_forward(params, tf, ri, tf_esm):
    tf_idx = jnp.argmax(tf, axis=-1)
    w = jax.nn.softmax(params["esm_s_combine"])
    esm_s = jnp.einsum("n,blne->ble", w, tf_esm.astype(jnp.float32))
    mu = esm_s.mean(-1, keepdims=True)
    var = ((esm_s - mu) ** 2).mean(-1, keepdims=True)
    xn = (esm_s - mu) * jax.lax.rsqrt(var + LN_EPS)
    xn = xn * params["ln_gamma"][0] + params["ln_beta"][0]
    h = jnp.maximum(xn @ params["w1"] + params["b1"][0], 0.0)
    s_s = h @ params["w2"] + params["b2"][0]
    s_s = s_s + jnp.take(params["emb"], tf_idx, axis=0)

    ri_f = ri.astype(jnp.float32)
    d = ri_f[..., :, None] - ri_f[..., None, :]
    bins = jnp.arange(-RELPOS_K, RELPOS_K + 1, dtype=jnp.float32)
    am = jnp.argmin(jnp.abs(d[..., None] - bins), axis=-1)
    oh = jax.nn.one_hot(am, NO_BINS, dtype=jnp.float32)
    s_z = oh @ params["w_relpos"] + params["b_relpos"][0]
    return s_s, s_z


# --------------------------------- main --------------------------------------
if __name__ == "__main__":
    key = jax.random.PRNGKey(0)
    ks = jax.random.split(key, 12)

    # deterministic synthetic parameters (shapes from InputEmbedder.__init__)
    emb = 0.1 * jax.random.normal(ks[0], (N_TOKENS, C_M), jnp.float32)
    emb = emb.at[0].set(0.0)  # nn.Embedding(padding_idx=0)
    params = {
        "esm_s_combine": jnp.zeros((NL,), jnp.float32),          # init as in the module
        "ln_gamma": jnp.ones((1, ESM_EMB_DIM), jnp.float32),
        "ln_beta": jnp.zeros((1, ESM_EMB_DIM), jnp.float32),
        "w1": 0.1 * jax.random.normal(ks[1], (ESM_EMB_DIM, C_M), jnp.float32),
        "b1": 0.1 * jax.random.normal(ks[2], (1, C_M), jnp.float32),
        "w2": 0.1 * jax.random.normal(ks[3], (C_M, C_M), jnp.float32),
        "b2": 0.1 * jax.random.normal(ks[4], (1, C_M), jnp.float32),
        "emb": emb,
        "w_relpos": 0.1 * jax.random.normal(ks[5], (NO_BINS, C_Z), jnp.float32),
        "b_relpos": 0.1 * jax.random.normal(ks[6], (1, C_Z), jnp.float32),
    }
    # bf16 copies of the MXU-side weights (v6e/v7x MXU is bf16-native; f32 accumulation
    # is preserved via preferred_element_type in the kernel).
    params["w1_bf16"] = params["w1"].astype(jnp.bfloat16)
    params["w2_bf16"] = params["w2"].astype(jnp.bfloat16)
    params["emb_bf16"] = params["emb"].astype(jnp.bfloat16)

    # deterministic example inputs
    tf_labels = jax.random.randint(ks[7], (B, L), 0, TF_DIM)
    tf = jax.nn.one_hot(tf_labels, TF_DIM, dtype=jnp.float32)            # [B, L, 21]
    ri = jnp.stack([jnp.arange(L, dtype=jnp.int32),
                    3 * jnp.arange(L, dtype=jnp.int32)])                 # [B, L], exercises clip
    # TODO(synk): synthetic stand-in for the pretrained ESM LM per-layer representations
    # (torch.hub model has no Pallas equivalent); stored bf16 as the LM would emit.
    tf_esm = jax.random.normal(
        ks[8], (B, L, NL, ESM_EMB_DIM), jnp.float32).astype(jnp.bfloat16)

    s_s, s_z = input_embedder_forward(params, tf, ri, tf_esm)
    jax.block_until_ready((s_s, s_z))

    s_s_ref, s_z_ref = reference_forward(params, tf, ri, tf_esm)
    assert s_s.shape == (B, L, C_M) and s_z.shape == (B, L, L, C_Z)
    # sequence path uses bf16 MXU inputs vs the f32 reference -> loose tolerance;
    # pair path is exact f32 selection.
    assert jnp.allclose(s_s, s_s_ref, atol=5e-2, rtol=5e-2), "sequence embedding mismatch"
    assert jnp.allclose(s_z, s_z_ref, atol=1e-5, rtol=1e-5), "pair embedding mismatch"

    print("KERNEL_OK")
</pallas_src>

<mosaic_0001>
module attributes {stable_mosaic.version = 11 : i64} {
  func.func @seq_embed_kernel(%arg0: i32, %arg1: memref<16x640xbf16, #tpu.memory_space<vmem>>, %arg2: memref<640x128xbf16, #tpu.memory_space<vmem>>, %arg3: memref<16x23xbf16, #tpu.memory_space<vmem>>, %arg4: memref<1x128xf32, #tpu.memory_space<vmem>>, %arg5: memref<1x128xf32, #tpu.memory_space<vmem>>, %arg6: memref<128x128xbf16, #tpu.memory_space<vmem>>, %arg7: memref<1x128xf32, #tpu.memory_space<vmem>>, %arg8: memref<128x128xbf16, #tpu.memory_space<vmem>>, %arg9: memref<1x128xf32, #tpu.memory_space<vmem>>, %arg10: memref<23x128xbf16, #tpu.memory_space<vmem>>, %arg11: memref<16x128xf32, #tpu.memory_space<vmem>>) attributes {dimension_semantics = [#tpu.dimension_semantics<parallel>], iteration_bounds = array<i64: 1>, scalar_prefetch = 0 : i64, scratch_operands = 0 : i64, tpu.core_type = #tpu.core_type<tc>, window_params = [{transform_indices = @transform_0, window_bounds = array<i64: 16, 640>}, {pipeline_mode = #tpu.pipeline_mode<synchronous>, transform_indices = @transform_1, window_bounds = array<i64: 640, 128>}, {transform_indices = @transform_2, window_bounds = array<i64: 16, 23>}, {pipeline_mode = #tpu.pipeline_mode<synchronous>, transform_indices = @transform_3, window_bounds = array<i64: 1, 128>}, {pipeline_mode = #tpu.pipeline_mode<synchronous>, transform_indices = @transform_4, window_bounds = array<i64: 1, 128>}, {pipeline_mode = #tpu.pipeline_mode<synchronous>, transform_indices = @transform_5, window_bounds = array<i64: 128, 128>}, {pipeline_mode = #tpu.pipeline_mode<synchronous>, transform_indices = @transform_6, window_bounds = array<i64: 1, 128>}, {pipeline_mode = #tpu.pipeline_mode<synchronous>, transform_indices = @transform_7, window_bounds = array<i64: 128, 128>}, {pipeline_mode = #tpu.pipeline_mode<synchronous>, transform_indices = @transform_8, window_bounds = array<i64: 1, 128>}, {pipeline_mode = #tpu.pipeline_mode<synchronous>, transform_indices = @transform_9, window_bounds = array<i64: 23, 128>}, {transform_indices = @transform_10, window_bounds = array<i64: 16, 128>}]} {
    %c0 = arith.constant 0 : index
    %c0_0 = arith.constant 0 : index
    %0 = vector.load %arg1[%c0, %c0_0] : memref<16x640xbf16, #tpu.memory_space<vmem>>, vector<16x640xbf16>
    %c0_1 = arith.constant 0 : index
    %c0_2 = arith.constant 0 : index
    %1 = vector.load %arg2[%c0_1, %c0_2] : memref<640x128xbf16, #tpu.memory_space<vmem>>, vector<640x128xbf16>
    %cst = arith.constant dense<0.000000e+00> : vector<16x128xf32>
    %2 = tpu.matmul %0, %1, %cst {dimension_numbers = #tpu.dot_dimension_numbers<[1], [0], [0], [1], [0, 0, 1, 1], [], []>} : vector<16x640xbf16>, vector<640x128xbf16>, vector<16x128xf32> -> vector<16x128xf32>
    %cst_3 = arith.constant dense<0.000000e+00> : vector<16xf32>
    %3 = vector.multi_reduction <add>, %2, %cst_3 [1] : vector<16x128xf32> to vector<16xf32>
    %4 = vector.shape_cast %3 : vector<16xf32> to vector<16x1xf32>
    %cst_4 = arith.constant 1.280000e+02 : f32
    %5 = vector.broadcast %cst_4 : f32 to vector<16x1xf32>
    %6 = arith.divf %4, %5 : vector<16x1xf32>
    %7 = vector.broadcast %6 : vector<16x1xf32> to vector<16x128xf32>
    %8 = arith.subf %2, %7 : vector<16x128xf32>
    %9 = arith.mulf %8, %8 : vector<16x128xf32>
    %cst_5 = arith.constant dense<0.000000e+00> : vector<16xf32>
    %10 = vector.multi_reduction <add>, %9, %cst_5 [1] : vector<16x128xf32> to vector<16xf32>
    %11 = vector.shape_cast %10 : vector<16xf32> to vector<16x1xf32>
    %cst_6 = arith.constant 1.280000e+02 : f32
    %12 = vector.broadcast %cst_6 : f32 to vector<16x1xf32>
    %13 = arith.divf %11, %12 : vector<16x1xf32>
    %14 = vector.broadcast %6 : vector<16x1xf32> to vector<16x128xf32>
    %15 = arith.subf %2, %14 : vector<16x128xf32>
    %cst_7 = arith.constant 9.99999974E-6 : f32
    %16 = vector.broadcast %cst_7 : f32 to vector<16x1xf32>
    %17 = arith.addf %13, %16 : vector<16x1xf32>
    %18 = math.rsqrt %17 : vector<16x1xf32>
    %19 = vector.broadcast %18 : vector<16x1xf32> to vector<16x128xf32>
    %20 = arith.mulf %15, %19 : vector<16x128xf32>
    %c0_8 = arith.constant 0 : index
    %c0_9 = arith.constant 0 : index
    %21 = vector.load %arg4[%c0_8, %c0_9] : memref<1x128xf32, #tpu.memory_space<vmem>>, vector<1x128xf32>
    %22 = vector.broadcast %21 : vector<1x128xf32> to vector<16x128xf32>
    %23 = arith.mulf %20, %22 : vector<16x128xf32>
    %c0_10 = arith.constant 0 : index
    %c0_11 = arith.constant 0 : index
    %24 = vector.load %arg5[%c0_10, %c0_11] : memref<1x128xf32, #tpu.memory_space<vmem>>, vector<1x128xf32>
    %25 = vector.broadcast %24 : vector<1x128xf32> to vector<16x128xf32>
    %26 = arith.addf %23, %25 : vector<16x128xf32>
    %27 = arith.truncf %26 : vector<16x128xf32> to vector<16x128xbf16>
    %c0_12 = arith.constant 0 : index
    %c0_13 = arith.constant 0 : index
    %28 = vector.load %arg6[%c0_12, %c0_13] : memref<128x128xbf16, #tpu.memory_space<vmem>>, vector<128x128xbf16>
    %cst_14 = arith.constant dense<0.000000e+00> : vector<16x128xf32>
    %29 = tpu.matmul %27, %28, %cst_14 {dimension_numbers = #tpu.dot_dimension_numbers<[1], [0], [0], [1], [0, 0, 1, 1], [], []>} : vector<16x128xbf16>, vector<128x128xbf16>, vector<16x128xf32> -> vector<16x128xf32>
    %c0_15 = arith.constant 0 : index
    %c0_16 = arith.constant 0 : index
    %30 = vector.load %arg7[%c0_15, %c0_16] : memref<1x128xf32, #tpu.memory_space<vmem>>, vector<1x128xf32>
    %31 = vector.broadcast %30 : vector<1x128xf32> to vector<16x128xf32>
    %32 = arith.addf %29, %31 : vector<16x128xf32>
    %cst_17 = arith.constant 0.000000e+00 : f32
    %33 = vector.broadcast %cst_17 : f32 to vector<16x128xf32>
    %34 = arith.maximumf %32, %33 : vector<16x128xf32>
    %35 = arith.truncf %34 : vector<16x128xf32> to vector<16x128xbf16>
    %c0_18 = arith.constant 0 : index
    %c0_19 = arith.constant 0 : index
    %36 = vector.load %arg8[%c0_18, %c0_19] : memref<128x128xbf16, #tpu.memory_space<vmem>>, vector<128x128xbf16>
    %cst_20 = arith.constant dense<0.000000e+00> : vector<16x128xf32>
    %37 = tpu.matmul %35, %36, %cst_20 {dimension_numbers = #tpu.dot_dimension_numbers<[1], [0], [0], [1], [0, 0, 1, 1], [], []>} : vector<16x128xbf16>, vector<128x128xbf16>, vector<16x128xf32> -> vector<16x128xf32>
    %c0_21 = arith.constant 0 : index
    %c0_22 = arith.constant 0 : index
    %38 = vector.load %arg9[%c0_21, %c0_22] : memref<1x128xf32, #tpu.memory_space<vmem>>, vector<1x128xf32>
    %39 = vector.broadcast %38 : vector<1x128xf32> to vector<16x128xf32>
    %40 = arith.addf %37, %39 : vector<16x128xf32>
    %c0_23 = arith.constant 0 : index
    %c0_24 = arith.constant 0 : index
    %41 = vector.load %arg3[%c0_23, %c0_24] : memref<16x23xbf16, #tpu.memory_space<vmem>>, vector<16x23xbf16>
    %c0_25 = arith.constant 0 : index
    %c0_26 = arith.constant 0 : index
    %42 = vector.load %arg10[%c0_25, %c0_26] : memref<23x128xbf16, #tpu.memory_space<vmem>>, vector<23x128xbf16>
    %cst_27 = arith.constant dense<0.000000e+00> : vector<16x128xf32>
    %43 = tpu.matmul %41, %42, %cst_27 {dimension_numbers = #tpu.dot_dimension_numbers<[1], [0], [0], [1], [0, 0, 1, 1], [], []>} : vector<16x23xbf16>, vector<23x128xbf16>, vector<16x128xf32> -> vector<16x128xf32>
    %44 = arith.addf %40, %43 : vector<16x128xf32>
    %c0_28 = arith.constant 0 : index
    %c0_29 = arith.constant 0 : index
    %45 = vector.load %arg11[%c0_28, %c0_29] : memref<16x128xf32, #tpu.memory_space<vmem>>, vector<16x128xf32>
    tpu.vector_store %arg11[%c0_28, %c0_29], %44 {strides = array<i32>} : memref<16x128xf32, #tpu.memory_space<vmem>>, vector<16x128xf32>,
    return
  }
  func.func @transform_0(%arg0: i32) -> (i32, i32) {
    %c0_i32 = arith.constant 0 : i32
    %c0_i32_0 = arith.constant 0 : i32
    return %arg0, %c0_i32 : i32, i32
  }
  func.func @transform_1(%arg0: i32) -> (i32, i32) {
    %c0_i32 = arith.constant 0 : i32
    %c0_i32_0 = arith.constant 0 : i32
    %c0_i32_1 = arith.constant 0 : i32
    return %c0_i32, %c0_i32_0 : i32, i32
  }
  func.func @transform_2(%arg0: i32) -> (i32, i32) {
    %c0_i32 = arith.constant 0 : i32
    %c0_i32_0 = arith.constant 0 : i32
    return %arg0, %c0_i32 : i32, i32
  }
  func.func @transform_3(%arg0: i32) -> (i32, i32) {
    %c0_i32 = arith.constant 0 : i32
    %c0_i32_0 = arith.constant 0 : i32
    %c0_i32_1 = arith.constant 0 : i32
    return %c0_i32, %c0_i32_0 : i32, i32
  }
  func.func @transform_4(%arg0: i32) -> (i32, i32) {
    %c0_i32 = arith.constant 0 : i32
    %c0_i32_0 = arith.constant 0 : i32
    %c0_i32_1 = arith.constant 0 : i32
    return %c0_i32, %c0_i32_0 : i32, i32
  }
  func.func @transform_5(%arg0: i32) -> (i32, i32) {
    %c0_i32 = arith.constant 0 : i32
    %c0_i32_0 = arith.constant 0 : i32
    %c0_i32_1 = arith.constant 0 : i32
    return %c0_i32, %c0_i32_0 : i32, i32
  }
  func.func @transform_6(%arg0: i32) -> (i32, i32) {
    %c0_i32 = arith.constant 0 : i32
    %c0_i32_0 = arith.constant 0 : i32
    %c0_i32_1 = arith.constant 0 : i32
    return %c0_i32, %c0_i32_0 : i32, i32
  }
  func.func @transform_7(%arg0: i32) -> (i32, i32) {
    %c0_i32 = arith.constant 0 : i32
    %c0_i32_0 = arith.constant 0 : i32
    %c0_i32_1 = arith.constant 0 : i32
    return %c0_i32, %c0_i32_0 : i32, i32
  }
  func.func @transform_8(%arg0: i32) -> (i32, i32) {
    %c0_i32 = arith.constant 0 : i32
    %c0_i32_0 = arith.constant 0 : i32
    %c0_i32_1 = arith.constant 0 : i32
    return %c0_i32, %c0_i32_0 : i32, i32
  }
  func.func @transform_9(%arg0: i32) -> (i32, i32) {
    %c0_i32 = arith.constant 0 : i32
    %c0_i32_0 = arith.constant 0 : i32
    %c0_i32_1 = arith.constant 0 : i32
    return %c0_i32, %c0_i32_0 : i32, i32
  }
  func.func @transform_10(%arg0: i32) -> (i32, i32) {
    %c0_i32 = arith.constant 0 : i32
    %c0_i32_0 = arith.constant 0 : i32
    return %arg0, %c0_i32 : i32, i32
  }
}

</mosaic_0001>

<bundles_post_ra>
// kernel: tpu_custom_call.1
= control target key start
LH: loop header
LB: loop body
LE: loop exit
PB: predicated region body
PF: predicated region fallthrough
CT: control target
= control target key end

     0   :  { %15 = vsyncpa [#allocation3], 0  ;;  %s1591_s0 = inlined_call_operand.hbm [shape: bf16[16,640], index: 0, kind: input, shape index: {}]   ;;  %s1592_s1 = inlined_call_operand.hbm [shape: bf16[640,128], index: 1, kind: input, shape index: {}]   ;;  %s1593_s2 = inlined_call_operand.hbm [shape: bf16[16,23], index: 2, kind: input, shape index: {}]   ;;  %s1594_s3 = inlined_call_operand.vmem [shape: f32[1,128], index: 3, kind: input, shape index: {}]   ;;  %s1595_s4 = inlined_call_operand.vmem [shape: f32[1,128], index: 4, kind: input, shape index: {}]   ;;  %s1596_s5 = inlined_call_operand.hbm [shape: bf16[128,128], index: 5, kind: input, shape index: {}]   ;;  %s1597_s6 = inlined_call_operand.vmem [shape: f32[1,128], index: 6, kind: input, shape index: {}]   ;;  %s1598_s7 = inlined_call_operand.hbm [shape: bf16[128,128], index: 7, kind: input, shape index: {}]   ;;  %s1599_s8 = inlined_call_operand.vmem [shape: f32[1,128], index: 8, kind: input, shape index: {}]   ;;  %s1600_s9 = inlined_call_operand.vmem [shape: bf16[23,128], index: 9, kind: input, shape index: {}]   ;;  %s1601_s10 = inlined_call_operand.hbm [shape: f32[16,128], index: 10, kind: output, shape index: {}]  }
   0x1   :  { %16 = vsyncpa [#allocation6], 0 }
   0x2   :  { %17 = vsyncpa [#allocation9], 0 }
   0x3   :  { %18 = vsyncpa [#allocation4], 0  ;;  %s1385_s13 = smov [#allocation5]   ;;  %s1245_s17 = scalar_lea.hbm %s1592_s1, 5120 }
   0x4   :  { %s36_s14 = sshll.u32 %s1385_s13, 4  ;;  %p1246_p0 = scmp.ne.s32.totalorder %s1592_s1, %s1245_s17  ;;  %s37_s14 = int_to_ptr.vmem [resolvable:$true] %s36_s14 }
   0x5   :  { %p1249_p1 = scmp.lt.u32.totalorder %s1245_s17, %s1592_s1 }
   0x7   :  { %p1251_p2 = pnand %p1249_p1, %p1246_p0 }
   0x9   :  { %1254 = shalt.err (!%p1251_p2)
}
   0xa   :  { %s1255_s22 = scalar_lea.vmem %s37_s14, 5120  ;;  %p1260_p4 = scmp.lt.s32.totalorder %s37_s14, %s37_s14 }
   0xb   :  { %p1256_p3 = scmp.ne.s32.totalorder %s37_s14, %s1255_s22  ;;  %p1261_p5 = scmp.lt.s32.totalorder %s1255_s22, %s1255_s22 }
   0xd   :  { %p1262_p6 = por %p1261_p5, %p1260_p4 }
   0xf   :  { %p1263_p7 = pnand %p1262_p6, %p1256_p3 }
  0x11   :  { %1266 = shalt.err (!%p1263_p7)
}
  0x12   :  { %s1386_s23 = smov 64   ;;  %s1387_s24 = smov 4  }
  0x13   :  { %42 = dma.hbm_to_vmem [thread:$0]  %s1592_s1, 5120, %s37_s14, [#allocation6], %s1386_s23, %s1386_s23, %s1387_s24  }
  0x14   :  { %s1388_s27 = smov [#allocation8]   ;;  %s1389_s29 = smov [#allocation2]  }
  0x15   :  { %s64_s28 = sshll.u32 %s1388_s27, 4  ;;  %s24_s30 = sshll.u32 %s1389_s29, 4  ;;  %s65_s28 = int_to_ptr.vmem [resolvable:$true] %s64_s28  ;;  %s25_s30 = int_to_ptr.vmem [resolvable:$true] %s24_s30 }
  0x16   :  { %s1267_s13 = scalar_lea.hbm %s1596_s5, 1024 }
  0x17   :  { %p1268_p8 = scmp.ne.s32.totalorder %s1596_s5, %s1267_s13  ;;  %p1271_p9 = scmp.lt.u32.totalorder %s1267_s13, %s1596_s5 }
  0x19   :  { %p1273_p10 = pnand %p1271_p9, %p1268_p8 }
  0x1b   :  { %1276 = shalt.err (!%p1273_p10)
}
  0x1c   :  { %s1277_s1 = scalar_lea.vmem %s65_s28, 1024  ;;  %p1282_p12 = scmp.lt.s32.totalorder %s65_s28, %s65_s28 }
  0x1d   :  { %p1278_p11 = scmp.ne.s32.totalorder %s65_s28, %s1277_s1  ;;  %p1283_p13 = scmp.lt.s32.totalorder %s1277_s1, %s1277_s1 }
  0x1f   :  { %p1284_p0 = por %p1283_p13, %p1282_p12 }
  0x21   :  { %p1285_p1 = pnand %p1284_p0, %p1278_p11 }
  0x23   :  { %1288 = shalt.err (!%p1285_p1)
}
  0x24   :  { %70 = dma.hbm_to_vmem [thread:$0]  %s1596_s5, 1024, %s65_s28, [#allocation9], %s1386_s23, %s1386_s23, %s1387_s24  }
  0x25   :  { %s1289_s22 = scalar_lea.hbm %s1591_s0, 640 }
  0x26   :  { %p1290_p2 = scmp.ne.s32.totalorder %s1591_s0, %s1289_s22  ;;  %p1293_p3 = scmp.lt.u32.totalorder %s1289_s22, %s1591_s0 }
  0x28   :  { %p1295_p4 = pnand %p1293_p3, %p1290_p2 }
  0x2a   :  { %1298 = shalt.err (!%p1295_p4)
}
  0x2b   :  { %s1299_s11 = scalar_lea.vmem %s25_s30, 640  ;;  %p1304_p6 = scmp.lt.s32.totalorder %s25_s30, %s25_s30 }
  0x2c   :  { %p1300_p5 = scmp.ne.s32.totalorder %s25_s30, %s1299_s11  ;;  %p1305_p7 = scmp.lt.s32.totalorder %s1299_s11, %s1299_s11 }
  0x2e   :  { %p1306_p8 = por %p1305_p7, %p1304_p6 }
  0x30   :  { %p1307_p9 = pnand %p1306_p8, %p1300_p5 }
  0x32   :  { %1310 = shalt.err (!%p1307_p9)
}
  0x33   :  { %s1390_s5 = smov 320   ;;  %s1391_s28 = smov 20  }
  0x34   :  { %30 = dma.hbm_to_vmem [thread:$0]  %s1591_s0, 640, %s25_s30, [#allocation3], %s1390_s5, %s1390_s5, %s1391_s28  }
  0x35   :  { %s1392_s15 = smov [#allocation7]   ;;  %s1393_s17 = smov [#allocation10]  }
  0x36   :  { %s48_s16 = sshll.u32 %s1392_s15, 4  ;;  %s78_s18 = sshll.u32 %s1393_s17, 4  ;;  %s49_s16 = int_to_ptr.vmem [resolvable:$true] %s48_s16  ;;  %s79_s18 = int_to_ptr.vmem [resolvable:$true] %s78_s18 }
  0x37   :  { %s1311_s19 = scalar_lea.hbm %s1593_s2, 128 }
  0x38   :  { %p1312_p10 = scmp.ne.s32.totalorder %s1593_s2, %s1311_s19  ;;  %p1315_p11 = scmp.lt.u32.totalorder %s1311_s19, %s1593_s2 }
  0x3a   :  { %p1317_p12 = pnand %p1315_p11, %p1312_p10 }
  0x3c   :  { %1320 = shalt.err (!%p1317_p12)
}
  0x3d   :  { %s1321_s0 = scalar_lea.vmem %s49_s16, 128  ;;  %p1326_p0 = scmp.lt.s32.totalorder %s49_s16, %s49_s16 }
  0x3e   :  { %p1322_p13 = scmp.ne.s32.totalorder %s49_s16, %s1321_s0  ;;  %p1327_p1 = scmp.lt.s32.totalorder %s1321_s0, %s1321_s0 }
  0x40   :  { %p1328_p2 = por %p1327_p1, %p1326_p0 }
  0x42   :  { %p1329_p3 = pnand %p1328_p2, %p1322_p13 }
  0x44   :  { %1332 = shalt.err (!%p1329_p3)
}
  0x45   :  { %54 = dma.hbm_to_vmem [thread:$0]  %s1593_s2, 128, %s49_s16, [#allocation6], %s1386_s23, %s1386_s23, %s1387_s24  }
  0x46   :  { %s1333_s11 = scalar_lea.hbm %s1598_s7, 1024 }
  0x47   :  { %p1334_p4 = scmp.ne.s32.totalorder %s1598_s7, %s1333_s11  ;;  %p1337_p5 = scmp.lt.u32.totalorder %s1333_s11, %s1598_s7 }
  0x49   :  { %p1339_p6 = pnand %p1337_p5, %p1334_p4 }
  0x4b   :  { %1342 = shalt.err (!%p1339_p6)
}
  0x4c   :  { %s1343_s15 = scalar_lea.vmem %s79_s18, 1024  ;;  %p1348_p8 = scmp.lt.s32.totalorder %s79_s18, %s79_s18 }
  0x4d   :  { %p1344_p7 = scmp.ne.s32.totalorder %s79_s18, %s1343_s15  ;;  %p1349_p9 = scmp.lt.s32.totalorder %s1343_s15, %s1343_s15 }
  0x4f   :  { %p1350_p10 = por %p1349_p9, %p1348_p8 }
  0x51   :  { %p1351_p11 = pnand %p1350_p10, %p1344_p7 }
  0x53   :  { %1354 = shalt.err (!%p1351_p11)
}
  0x54   :  { %84 = dma.hbm_to_vmem [thread:$0]  %s1598_s7, 1024, %s79_s18, [#allocation9], %s1386_s23, %s1386_s23, %s1387_s24  }
  0x55   :  { %1377 = dma.done.wait [#allocation3], 640  }
  0x56   :  { %1378 = vsyncadd [#allocation3], 4294966656 }
  0x57   :  { %1379 = dma.done.wait [#allocation6], 5248  }
  0x58   :  { %1380 = vsyncadd [#allocation6], 4294962048 }
  0x59   :  { %1381 = dma.done.wait [#allocation9], 2048  }
  0x5a   :  { %1382 = vsyncadd [#allocation9], 4294965248  ;;  %v1394_v0 = vmov 0.0   ;;  %vm1395_vm0 = vmmov 0   ;;  %v1175_v1 = vld [vmem:[#allocation5 + $0x40] sm:$0xff]   ;;  %v1177_v3 = vld [vmem:[#allocation5 + $0x48] sm:$0xff]  }
  0x5b   :  { %1086 = vmatprep.subr.bf16.mxu0 %v1394_v0  ;;  %1102 = vmatprep.mubr.msk.bf16.mxu0 %vm1395_vm0, %v1394_v0  ;;  %v1176_v2 = vld [vmem:[#allocation5] sm:$0xff]   ;;  %v1178_v4 = vld [vmem:[#allocation5 + $0x8] sm:$0xff]   ;;  %v1179_v5 = vld [vmem:[#allocation5 + $0x50] sm:$0xff]   ;;  %vm872_vm1 = vcmask 1042432   ;;  %vm873_vm2 = vcmask 1043456   ;;  %vm868_vm3 = vcmask 187392  }
  0x5c   :  { %1012 = vmatprep.subr.bf16.mxu1 %v1175_v1  ;;  %v1180_v6 = vld [vmem:[#allocation5 + $0x10] sm:$0xff]   ;;  %v1181_v7 = vld [vmem:[#allocation5 + $0x58] sm:$0xff]   ;;  %v1183_v9 = vld [vmem:[#allocation5 + $0x60] sm:$0xff]   ;;  %s1397_s21 = smov [#allocation11]  }
  0x5d   :  { %1013 = vmatpush3.bf16.msra.mxu1 %v1176_v2  ;;  %v1182_v8 = vld [vmem:[#allocation5 + $0x18] sm:$0xff]   ;;  %v1184_v10 = vld [vmem:[#allocation5 + $0x20] sm:$0xff]   ;;  %v1185_v11 = vld [vmem:[#allocation5 + $0x68] sm:$0xff]  }
  0x5e   :  { %1014 = vmatprep.subr.bf16.mxu1 %v1177_v3  ;;  %v1193_v12 = vld [vmem:[#allocation2 + $0x4] ss:$20 sps:$4 sm:$0xff]   ;;  %v1186_v13 = vld [vmem:[#allocation5 + $0x28] sm:$0xff]   ;;  %v1196_v15 = vld [vmem:[#allocation5 + $0x100] sm:$0xff]  }
  0x5f   :  { %v1187_v14 = vld [vmem:[#allocation5 + $0x70] sm:$0xff]   ;;  %489 = vmatprep.mubr.bf16.mxu1 %v1193_v12  ;;  %1087 = vmatpush3.bf16.msra.mxu0 %v1196_v15  ;;  %v1199_v17 = vld [vmem:[#allocation5 + $0x108] sm:$0xff]   ;;  %v1189_v18 = vld [vmem:[#allocation5 + $0x78] sm:$0xff]  }
  0x60   :  { %v1188_v16 = vld [vmem:[#allocation5 + $0x30] sm:$0xff]   ;;  %1088 = vmatprep.subr.bf16.mxu0 %v1394_v0  ;;  %v1190_v20 = vld [vmem:[#allocation5 + $0x38] sm:$0xff]   ;;  %v1194_v21 = vld [vmem:[#allocation5 + $0xc0] sm:$0xff]  }
  0x61   :  { %1015 = vmatpush3.bf16.msra.mxu1 %v1178_v4  ;;  %v1202_v19 = vld [vmem:[#allocation5 + $0x110] sm:$0xff]   ;;  %v1191_v22 = vld [vmem:[#allocation2] ss:$20 sps:$4 sm:$0xff]   ;;  %v1195_v24 = vld [vmem:[#allocation5 + $0x80] sm:$0xff]  }
  0x62   :  { %1016 = vmatprep.subr.bf16.mxu1 %v1179_v5  ;;  %v1205_v23 = vld [vmem:[#allocation5 + $0x118] sm:$0xff]   ;;  %v1197_v25 = vld [vmem:[#allocation5 + $0xc8] sm:$0xff]   ;;  %v1208_v26 = vld [vmem:[#allocation5 + $0x120] sm:$0xff]  }
  0x63   :  { %1089 = vmatpush3.bf16.msra.mxu0 %v1199_v17  ;;  %v1198_v27 = vld [vmem:[#allocation5 + $0x88] sm:$0xff]   ;;  %v1200_v28 = vld [vmem:[#allocation5 + $0xd0] sm:$0xff]   ;;  %v1203_v31 = vld [vmem:[#allocation5 + $0xd8] sm:$0xff]  }
  0x64   :  { %1090 = vmatprep.subr.bf16.mxu0 %v1394_v0  ;;  %v1211_v29 = vld [vmem:[#allocation5 + $0x128] sm:$0xff]   ;;  %v1201_v30 = vld [vmem:[#allocation5 + $0x90] sm:$0xff]   ;;  %v1204_v32 = vld [vmem:[#allocation5 + $0x98] sm:$0xff]  }
  0x65   :  { %1017 = vmatpush3.bf16.msra.mxu1 %v1180_v6  ;;  %v1219_v33 = vld [vmem:[#allocation2 + $0xc] ss:$20 sps:$4 sm:$0xff]   ;;  %v1214_v34 = vld [vmem:[#allocation5 + $0x130] sm:$0xff]   ;;  %v1209_v38 = vld [vmem:[#allocation5 + $0xe8] sm:$0xff]  }
  0x66   :  { %1018 = vmatprep.subr.bf16.mxu1 %v1181_v7  ;;  %v1206_v35 = vld [vmem:[#allocation5 + $0xe0] sm:$0xff]   ;;  %v1220_v36 = vld [vmem:[#allocation5 + $0x138] sm:$0xff]   ;;  %v1210_v40 = vld [vmem:[#allocation5 + $0xa8] sm:$0xff]  }
  0x67   :  { %1091 = vmatpush3.bf16.msra.mxu0 %v1202_v19  ;;  %v1207_v37 = vld [vmem:[#allocation5 + $0xa0] sm:$0xff]   ;;  %v1221_v39 = vld [vmem:[#allocation2 + $0x10] ss:$20 sps:$4 sm:$0xff]   ;;  %v1212_v41 = vld [vmem:[#allocation5 + $0xf0] sm:$0xff]  }
  0x68   :  { %1092 = vmatprep.subr.bf16.mxu0 %v1394_v0  ;;  %v1213_v42 = vld [vmem:[#allocation5 + $0xb0] sm:$0xff]   ;;  %v1215_v43 = vld [vmem:[#allocation5 + $0xf8] sm:$0xff]   ;;  %v1222_v3 = vld [vmem:[#allocation8] sm:$0xff]  }
  0x69   :  { %1019 = vmatpush3.bf16.msra.mxu1 %v1182_v8  ;;  %v1216_v44 = vld [vmem:[#allocation5 + $0xb8] sm:$0xff]   ;;  %v1217_v45 = vld [vmem:[#allocation2 + $0x8] ss:$20 sps:$4 sm:$0xff]   ;;  %v1226_v15 = vld [vmem:[#allocation8 + $0x20] sm:$0xff]  }
  0x6a   :  { %1020 = vmatprep.subr.bf16.mxu1 %v1183_v9  ;;  %v1223_v12 = vld [vmem:[#allocation8 + $0x8] sm:$0xff]   ;;  %v1228_v17 = vld [vmem:[#allocation8 + $0x30] sm:$0xff]   ;;  %v1230_v19 = vld [vmem:[#allocation10] sm:$0xff]  }
  0x6b   :  { %1093 = vmatpush3.bf16.msra.mxu0 %v1205_v23  ;;  %v1234_v23 = vld [vmem:[#allocation10 + $0x20] sm:$0xff]  }
  0x6c   :  { %1094 = vmatprep.subr.bf16.mxu0 %v1394_v0 }
  0x6d   :  { %1021 = vmatpush3.bf16.msra.mxu1 %v1184_v10 }
  0x6e   :  { %1022 = vmatprep.subr.bf16.mxu1 %v1185_v11 }
  0x6f   :  { %1095 = vmatpush3.bf16.msra.mxu0 %v1208_v26 }
  0x70   :  { %1096 = vmatprep.subr.bf16.mxu0 %v1394_v0 }
  0x71   :  { %1023 = vmatpush3.bf16.msra.mxu1 %v1186_v13  ;;  %v1224_v13 = vld [vmem:[#allocation8 + $0x10] sm:$0xff]  }
  0x72   :  { %1024 = vmatprep.subr.bf16.mxu1 %v1187_v14  ;;  %v1225_v14 = vld [vmem:[#allocation8 + $0x18] sm:$0xff]  }
  0x73   :  { %1097 = vmatpush3.bf16.msra.mxu0 %v1211_v29 }
  0x74   :  { %1098 = vmatprep.subr.bf16.mxu0 %v1394_v0 }
  0x75   :  { %1025 = vmatpush3.bf16.msra.mxu1 %v1188_v16  ;;  %v1227_v16 = vld [vmem:[#allocation8 + $0x28] sm:$0xff]  }
  0x76   :  { %1026 = vmatprep.subr.bf16.mxu1 %v1189_v18  ;;  %v1229_v18 = vld [vmem:[#allocation8 + $0x38] sm:$0xff]  }
  0x77   :  { %1099 = vmatpush3.bf16.msra.mxu0 %v1214_v34 }
  0x78   :  { %1100 = vmatprep.subr.bf16.mxu0 %v1394_v0 }
  0x79   :  { %1027 = vmatpush3.bf16.msra.mxu1 %v1190_v20  ;;  %v1231_v20 = vld [vmem:[#allocation10 + $0x8] sm:$0xff]  }
  0x7a   :  { %1034 = vmatprep.subr.bf16.mxu1 %v1194_v21  ;;  %v1232_v21 = vld [vmem:[#allocation10 + $0x10] sm:$0xff]  }
  0x7b   :  { %1101 = vmatpush3.bf16.msra.mxu0 %v1220_v36 }
  0x7c   :  { %490 = vmatmul.mubr.bf16.vlgmr.msra.gmra.mrb[0].mxu1 %v1191_v22  ;;  %1126 = vmatprep.subr.bf16.mxu0 %v1394_v0  ;;  %v1233_v22 = vld [vmem:[#allocation10 + $0x18] sm:$0xff]  }
  0x7d   :  { %1035 = vmatpush3.bf16.msra.mxu1 %v1195_v24  ;;  %530 = vmatprep.mubr.bf16.mxu1 %v1219_v33  ;;  %v1235_v24 = vld [vmem:[#allocation10 + $0x28] sm:$0xff]   ;;  %v988_v33 = vld [vmem:[%s1594_s3] ss:$0 sm:$0xff] }
  0x7e   :  { %1036 = vmatprep.subr.bf16.mxu1 %v1197_v25  ;;  %1103 = vmatmul.mubr.bf16.vlgmr.msra.gmra.mrb[0].mxu0 %v1221_v39 }
  0x7f   :  { %1142 = vmatprep.mubr.msk.bf16.mxu0 %vm1395_vm0, %v1394_v0  ;;  %1127 = vmatpush3.bf16.msra.mxu0 %v1230_v19 }
  0x80   :  { %1128 = vmatprep.subr.bf16.mxu0 %v1394_v0 }
  0x81   :  { %1037 = vmatpush3.bf16.msra.mxu1 %v1198_v27 }
  0x82   :  { %1038 = vmatprep.subr.bf16.mxu1 %v1200_v28 }
  0x83   :  { %1129 = vmatpush3.bf16.msra.mxu0 %v1231_v20 }
  0x84   :  { %1130 = vmatprep.subr.bf16.mxu0 %v1394_v0 }
  0x85   :  { %1039 = vmatpush3.bf16.msra.mxu1 %v1201_v30 }
  0x86   :  { %1040 = vmatprep.subr.bf16.mxu1 %v1203_v31 }
  0x87   :  { %1131 = vmatpush3.bf16.msra.mxu0 %v1232_v21 }
  0x88   :  { %1132 = vmatprep.subr.bf16.mxu0 %v1394_v0 }
  0x89   :  { %1041 = vmatpush3.bf16.msra.mxu1 %v1204_v32 }
  0x8a   :  { %1042 = vmatprep.subr.bf16.mxu1 %v1206_v35 }
  0x8b   :  { %1133 = vmatpush3.bf16.msra.mxu0 %v1233_v22 }
  0x8c   :  { %1134 = vmatprep.subr.bf16.mxu0 %v1394_v0 }
  0x8d   :  { %1043 = vmatpush3.bf16.msra.mxu1 %v1207_v37  ;;  %v989_v37 = vld [vmem:[%s1595_s4] ss:$0 sm:$0xff] }
  0x8e   :  { %1044 = vmatprep.subr.bf16.mxu1 %v1209_v38 }
  0x8f   :  { %1135 = vmatpush3.bf16.msra.mxu0 %v1234_v23 }
  0x90   :  { %1136 = vmatprep.subr.bf16.mxu0 %v1394_v0 }
  0x91   :  { %1045 = vmatpush3.bf16.msra.mxu1 %v1210_v40 }
  0x92   :  { %1046 = vmatprep.subr.bf16.mxu1 %v1212_v41 }
  0x93   :  { %1137 = vmatpush3.bf16.msra.mxu0 %v1235_v24 }
  0x94   :  { %1138 = vmatprep.subr.bf16.mxu0 %v1394_v0 }
  0x95   :  { %1047 = vmatpush3.bf16.msra.mxu1 %v1213_v42  ;;  %v1236_v42 = vld [vmem:[#allocation10 + $0x30] sm:$0xff]  }
  0x96   :  { %1048 = vmatprep.subr.bf16.mxu1 %v1215_v43  ;;  %v1237_v43 = vld [vmem:[#allocation10 + $0x38] sm:$0xff]  }
  0x97   :  { %1139 = vmatpush3.bf16.msra.mxu0 %v1236_v42 }
  0x98   :  { %1140 = vmatprep.subr.bf16.mxu0 %v1394_v0 }
  0x99   :  { %1049 = vmatpush3.bf16.msra.mxu1 %v1216_v44  ;;  %v990_v44 = vld [vmem:[%s1597_s6] ss:$0 sm:$0xff] }
  0x9a   :  { %1106 = vmatprep.subr.bf16.mxu1 %v1394_v0 }
  0x9b   :  { %1141 = vmatpush3.bf16.msra.mxu0 %v1237_v43 }
  0x9c   :  { %531 = vmatmul.mubr.bf16.vlgmr.msra.gmra.mrb[4].mxu1 %v1217_v45  ;;  %1146 = vmatprep.subr.bf16.mxu0 %v1394_v0 }
  0x9d   :  { %1122 = vmatprep.mubr.msk.bf16.mxu1 %vm1395_vm0, %v1394_v0  ;;  %1107 = vmatpush3.bf16.msra.mxu1 %v1222_v3 }
  0x9e   :  { %1108 = vmatprep.subr.bf16.mxu1 %v1394_v0 }
  0xa1   :  { %1109 = vmatpush3.bf16.msra.mxu1 %v1223_v12 }
  0xa2   :  { %1110 = vmatprep.subr.bf16.mxu1 %v1394_v0 }
  0xa5   :  { %1111 = vmatpush3.bf16.msra.mxu1 %v1224_v13 }
  0xa6   :  { %1112 = vmatprep.subr.bf16.mxu1 %v1394_v0 }
  0xa9   :  { %1113 = vmatpush3.bf16.msra.mxu1 %v1225_v14 }
  0xaa   :  { %1114 = vmatprep.subr.bf16.mxu1 %v1394_v0 }
  0xad   :  { %1115 = vmatpush3.bf16.msra.mxu1 %v1226_v15 }
  0xae   :  { %1116 = vmatprep.subr.bf16.mxu1 %v1394_v0 }
  0xb1   :  { %1117 = vmatpush3.bf16.msra.mxu1 %v1227_v16 }
  0xb2   :  { %1118 = vmatprep.subr.bf16.mxu1 %v1394_v0 }
  0xb5   :  { %1119 = vmatpush3.bf16.msra.mxu1 %v1228_v17 }
  0xb6   :  { %1120 = vmatprep.subr.bf16.mxu1 %v1394_v0 }
  0xb9   :  { %1121 = vmatpush3.bf16.msra.mxu1 %v1229_v18 }
 0x14f   :  { %v1028_v46 = vpop.f32.mrb[0].mxu1 }
 0x150   :  { %v1029_v47 = vpop.f32.mrb[1].mxu1 }
 0x151   :  { %v1030_v48 = vadd.f32 %v1029_v47, %v1028_v46  ;;  %v1031_v49 = vpop.f32.mrb[2].mxu1  ;;  %v573_v52 = vpop.f32.mrb[0].mxu0 }
 0x152   :  { %v1032_v50 = vpop.f32.mrb[3].mxu1  ;;  %v1104_v53 = vpop.f32.mrb[1].mxu0 }
 0x153   :  { %v1033_v51 = vadd.f32 %v1032_v50, %v1031_v49  ;;  %v576_v54 = vpop.f32.mrb[2].mxu0 }
 0x154   :  { %v1105_v55 = vpop.f32.mrb[3].mxu0 }
 0x155   :  { %v1238_v55 = vld [vmem:[%s1600_s9] sm:$0xff]  }
 0x16f   :  { %v1050_v56 = vpop.f32.mrb[4].mxu1 }
 0x170   :  { %v1051_v57 = vpop.f32.mrb[5].mxu1 }
 0x171   :  { %v1052_v58 = vadd.f32 %v1051_v57, %v1050_v56  ;;  %v1053_v59 = vpop.f32.mrb[6].mxu1  ;;  %v1239_v56 = vld [vmem:[%s1600_s9 + $0x8] ss:$0 sps:$4 sm:$0xff]   ;;  %s929_s9 = sshll.u32 %s1397_s21, 4  ;;  %s930_s9 = int_to_ptr.vmem [resolvable:$true] %s929_s9 }
 0x172   :  { %v1054_v60 = vpop.f32.mrb[7].mxu1  ;;  %s1355_s22 = scalar_lea.vmem %s930_s9, 256  ;;  %p1360_p13 = scmp.lt.s32.totalorder %s930_s9, %s930_s9 }
 0x173   :  { %v533_v61 = vadd.f32 %v1052_v58, %v1030_v48  ;;  %v1055_v62 = vadd.f32 %v1054_v60, %v1053_v59  ;;  %v1240_v60 = vld [vmem:[#allocation7] sm:$0xff]   ;;  %p1356_p12 = scmp.ne.s32.totalorder %s930_s9, %s1355_s22  ;;  %p1361_p0 = scmp.lt.s32.totalorder %s1355_s22, %s1355_s22 }
 0x175   :  { %v574_v63 = vadd.f32 %v573_v52, %v533_v61  ;;  %v536_v1 = vadd.f32 %v1055_v62, %v1033_v51  ;;  %v1396_v51 = vmov 65535   ;;  %v999_v61 = vld [vmem:[%s1599_s8] ss:$0 sm:$0xff]  ;;  %p1362_p1 = por %p1361_p0, %p1360_p13 }
 0x176   :  { %v874_v52 = vsel %vm872_vm1, 4294967295, %v1396_v51 }
 0x177   :  { %v577_v2 = vadd.f32 %v576_v54, %v536_v1  ;;  %580 = vadd.xlane.f32.xlu0 %v574_v63  ;;  %v875_v58 = vsel %vm873_vm2, %v874_v52, 0  ;;  %p1363_p2 = pnand %p1362_p1, %p1356_p12 }
 0x178   :  { %v877_v59 = vand.u32 %v1239_v56, %v875_v58 }
 0x17b   :  { %582 = vadd.xlane.f32.xlu0 %v577_v2 }
 0x204   :  { %v581_v4 = vpop.xlane.xlu0 %580 }
 0x205   :  { %v585_v5 = vmul.f32 0.0078125, %v581_v4 }
 0x207   :  { %v587_v6 = vsub.f32 %v574_v63, %v585_v5 }
 0x208   :  { %v583_v7 = vpop.xlane.xlu0 %582 }
 0x209   :  { %v586_v8 = vmul.f32 0.0078125, %v583_v7  ;;  %v589_v9 = vmul.f32 %v587_v6, %v587_v6 }
 0x20b   :  { %v588_v10 = vsub.f32 %v577_v2, %v586_v8  ;;  %591 = vadd.xlane.f32.xlu1 %v589_v9 }
 0x20d   :  { %v590_v11 = vmul.f32 %v588_v10, %v588_v10 }
 0x20f   :  { %593 = vadd.xlane.f32.xlu1 %v590_v11 }
 0x298   :  { %v592_v25 = vpop.xlane.xlu1 %591 }
 0x299   :  { %v595_v26 = vmul.f32 0.0078125, %v592_v25 }
 0x29b   :  { %v597_v27 = vadd.f32 1e-05, %v595_v26 }
 0x29c   :  { %v594_v28 = vpop.xlane.xlu1 %593 }
 0x29d   :  { %1241 = vrsqrt.f32 %v597_v27  ;;  %v596_v29 = vmul.f32 0.0078125, %v594_v28 }
 0x29f   :  { %v598_v30 = vadd.f32 1e-05, %v596_v29 }
 0x2a1   :  { %1243 = vrsqrt.f32 %v598_v30 }
 0x2a7   :  { %v1242_v31 = vpop.eup %1241 }
 0x2a8   :  { %v601_v32 = vmul.f32 %v1242_v31, %v587_v6 }
 0x2aa   :  { %v610_v36 = vmul.f32 %v988_v33, %v601_v32 }
 0x2ab   :  { %v1244_v34 = vpop.eup %1243 }
 0x2ac   :  { %v602_v35 = vmul.f32 %v1244_v34, %v588_v10  ;;  %v619_v39 = vadd.f32 %v989_v37, %v610_v36 }
 0x2ae   :  { %v611_v38 = vmul.f32 %v988_v33, %v602_v35 }
 0x2b0   :  { %v620_v40 = vadd.f32 %v989_v37, %v611_v38 }
 0x2b2   :  { %v621_v41 = vpack.c.bf16 %v620_v40, %v619_v39 }
 0x2b4   :  { %1123 = vmatmul.mubr.bf16.vlgmr.msra.gmra.mrb[8].mxu1 %v621_v41 }
 0x387   :  { %v727_v45 = vpop.f32.mrb[8].mxu1 }
 0x388   :  { %v728_v46 = vadd.f32 %v990_v44, %v727_v45  ;;  %v1124_v47 = vpop.f32.mrb[9].mxu1 }
 0x389   :  { %v730_v48 = vpop.f32.mrb[10].mxu1 }
 0x38a   :  { %v731_v49 = vadd.f32 %v990_v44, %v730_v48  ;;  %v1125_v50 = vpop.f32.mrb[11].mxu1  ;;  %v734_v53 = vmax.f32 %v728_v46, 0.0 }
 0x38c   :  { %v735_v54 = vmax.f32 %v731_v49, 0.0 }
 0x38e   :  { %v736_v57 = vpack.c.bf16 %v735_v54, %v734_v53 }
 0x390   :  { %1143 = vmatmul.mubr.bf16.vlgmr.msra.gmra.mrb[4].mxu0 %v736_v57 }
 0x391   :  { %1147 = vmatpush3.bf16.msra.mxu0 %v1238_v55  ;;  %1150 = vmatprep.mubr.msk.bf16.mxu0 %vm1395_vm0, %v1394_v0 }
 0x392   :  { %1148 = vmatprep.subr.bf16.mxu0 %v1394_v0 }
 0x395   :  { %1149 = vmatpush3.bf16.msra.mxu0 %v877_v59 }
 0x39c   :  { %1151 = vmatmul.mubr.msk.bf16.vlgmr.msra.gmra.mrb[4].mxu0 %vm868_vm3, %v1240_v60 }
 0x46f   :  { %v913_v62 = vpop.f32.mrb[4].mxu0 }
 0x470   :  { %v1154_v63 = vadd.f32 %v999_v61, %v913_v62  ;;  %v1152_v1 = vpop.f32.mrb[5].mxu0 }
 0x471   :  { %v916_v2 = vpop.f32.mrb[6].mxu0 }
 0x472   :  { %922 = vst [vmem:[#allocation11] sm:$0xff] %v1154_v63  ;;  %v1155_v3 = vadd.f32 %v999_v61, %v916_v2  ;;  %v1153_v4 = vpop.f32.mrb[7].mxu0 }
 0x474   :  { %923 = vst [vmem:[#allocation11 + $0x8] sm:$0xff] %v1155_v3 }
 0x475   :  { %1366 = shalt.err (!%p1363_p2)
}
 0x476   :  { %s1367_s0 = scalar_lea.hbm %s1601_s10, 256 }
 0x477   :  { %p1368_p3 = scmp.ne.s32.totalorder %s1601_s10, %s1367_s0  ;;  %p1371_p4 = scmp.lt.u32.totalorder %s1367_s0, %s1601_s10 }
 0x479   :  { %p1373_p5 = pnand %p1371_p4, %p1368_p3 }
 0x47b   :  { %1376 = shalt.err (!%p1373_p5)
}
 0x47c   :  { %s1398_s11 = smov 128   ;;  %s1399_s5 = smov 8  }
 0x47d   :  { %935 = dma.vmem_to_hbm [thread:$0]  %s930_s9, 256, %s1601_s10, [#allocation4], %s1398_s11, %s1398_s11, %s1399_s5  }
 0x47e   :  { %1383 = dma.done.wait [#allocation4], 256  }
 0x47f   :  { %1384 = vsyncadd [#allocation4], 4294967040 }
 0x480   :  { %939 = vsyncpa [#allocation3], 1 }
 0x481   :  { %940 = vsyncpa [#allocation6], 1 }
 0x482   :  { %941 = vsyncpa [#allocation9], 1 }
 0x483   :  { %942 = vsyncpa [#allocation4], 1 }

</bundles_post_ra>
